<compile_context>
chip_gen: v5e
topology: v5e:2x2
jax: 0.10.0
libtpu: 0.0.40
codegen_flags: <defaults>
</compile_context>

<pallas_src>
import math
from functools import partial

import jax
import jax.numpy as jnp
from jax.experimental import pallas as pl
from jax.experimental.pallas import tpu as pltpu


def _res_attention_kernel(q_ref, k_ref, v_ref, o_ref, a_ref, *, scale, hg, d,
                          exp_dtype, mxu_dtype):
    """One grid step: hg heads x one L-tile of queries against all S keys.

    q_ref: (1, hg, tL, E)   k_ref: (1, hg, S, E)   v_ref: (1, hg, S, D)
    o_ref: (1, tL, hg*D)    a_ref: (1, hg, tL, S)
    """
    pv_slabs = []
    # TODO(synk): for very large hg a lax.fori_loop(unroll=2..4) over heads would
    # bound live ranges better than this static unroll; the wrapper's VMEM budget
    # already assumes every head's (tL, S) f32 temporaries can be live at once.
    for h in range(hg):  # static unroll over the heads folded into this step
        q = q_ref[0, h]                       # (tL, E) -- input dtype (MXU-native)
        k = k_ref[0, h]                       # (S, E)
        v = v_ref[0, h]                       # (S, D)
        if mxu_dtype is not None:             # optional f32 -> bf16 MXU trade-off
            q = q.astype(mxu_dtype)
            k = k.astype(mxu_dtype)
            v = v.astype(mxu_dtype)

        # Fold the softmax scale into q: tL*E VPU multiplies instead of tL*S.
        q = q * jnp.asarray(scale, dtype=q.dtype)

        # scores[l, s] = sum_e q[l, e] * k[s, e]   (f32 accumulation on the MXU)
        scores = jax.lax.dot_general(
            q, k, (((1,), (1,)), ((), ())),
            preferred_element_type=jnp.float32)                # (tL, S) f32

        # numerically-stable softmax over the key axis
        m = jnp.max(scores, axis=-1, keepdims=True)
        x = scores - m
        if jnp.dtype(exp_dtype) != jnp.dtype(jnp.float32):
            x = x.astype(exp_dtype)           # bf16 exp (v6e/v7x EUP) for bf16 inputs
        e = jnp.exp(x)
        denom = jnp.sum(e, axis=-1, keepdims=True, dtype=jnp.float32)
        inv = pl.reciprocal(denom, approx=True).astype(e.dtype)   # EUP slot
        attn = e * inv                                             # (tL, S)

        # One cast reused for both the A store and (in the common case) the PV matmul.
        attn_store = attn.astype(a_ref.dtype)
        a_ref[0, h] = attn_store
        pv_lhs = attn_store if attn_store.dtype == v.dtype else attn.astype(v.dtype)

        # V[l, d] = sum_s attn[l, s] * v[s, d]   (f32 accumulation on the MXU)
        pv = jnp.dot(pv_lhs, v, preferred_element_type=jnp.float32)   # (tL, D) f32
        pv_slabs.append(pv.astype(o_ref.dtype))

    # Single full-width lane-dense store of the whole (tL, hg*D) slab instead of
    # hg narrow (possibly masked) column stores.
    o_ref[0] = pv_slabs[0] if hg == 1 else jnp.concatenate(pv_slabs, axis=-1)


def _tpu_vmem_capacity_bytes():
    """Physical VMEM per core; conservative (v7x, 64 MiB) fallback if unknown."""
    try:
        cap = int(pltpu.get_tpu_info().vmem_capacity_bytes)
        if cap > 0:
            return cap
    except Exception:
        pass
    return 64 * 1024 * 1024


def _has_bf16_eup():
    """v5e (and older) have no bf16 EUP; the bf16-exp trick only pays on v6e/v7x."""
    try:
        kind = jax.devices()[0].device_kind.lower()
    except Exception:
        return True
    return not any(tag in kind for tag in ("v2", "v3", "v4", "v5 lite", "v5lite", "v5e"))


def _pick_tiles(B, L, S, H, E, D, itemsize, budget_bytes):
    """Pick (heads-per-step hg, query tile tl) so the per-step working set —
    double-buffered blocks plus *all* hg heads' f32 softmax temporaries being
    live under the static head unroll — fits within budget_bytes."""

    def step_bytes(hg, tl):
        inputs = hg * (tl * E + S * (E + D)) * itemsize     # q tile + resident K/V
        outputs = (hg * tl * S + tl * hg * D) * itemsize    # A tile + V slab
        live_f32 = hg * 2 * tl * S * 4                      # scores/exp for every head
        return 2 * (inputs + outputs) + live_f32            # x2: pipeline double-buffering

    # tl must be a multiple of 8 or the full L; sub-32-bit dtypes need >=16 (bf16)
    # or >=32 (int8/fp8) so the (tl, S) / (tl, hg*D) blocks keep packed-sublane tiles.
    min_tl = 8 if itemsize >= 4 else (16 if itemsize == 2 else 32)
    tl_candidates = sorted(
        {t for t in (512, 256, 128, 64, 32, 16, 8) if min_tl <= t <= L} | {L},
        reverse=True)

    # hg must divide H; the V-slab's last dim hg*D must be the full H*D or a
    # multiple of 128 lanes so its store stays unmasked / lane-dense.
    head_candidates = [h for h in range(H, 0, -1)
                       if H % h == 0 and (h == H or (h * D) % 128 == 0)]
    if B < 2 and H > 1:
        # v7x megacore: keep >= 2 parallel head-groups when batch can't feed 2 cores.
        halved = [h for h in head_candidates if h <= H // 2]
        if halved:
            head_candidates = halved

    best = None
    for hg in head_candidates:
        for tl in tl_candidates:
            sb = step_bytes(hg, tl)
            if sb <= budget_bytes:
                key = (hg * tl, tl)
                if best is None or key > best[0]:
                    best = (key, hg, tl, sb)
    if best is not None:
        return best[1], best[2], best[3]

    # TODO(synk): nothing fits (very long S) — needs an online-softmax S grid axis.
    hg, tl = head_candidates[-1], tl_candidates[-1]
    return hg, tl, step_bytes(hg, tl)


@partial(jax.jit, static_argnames=("scale", "use_bf16_matmul"))
def res_attention(queries, keys, values, scale=None, use_bf16_matmul=False):
    """Pallas ResAttention forward.

    queries: (B, L, H, E), keys: (B, S, H, E), values: (B, S, H, D)
    Returns (V, A) with V: (B, L, H, D), A: (B, H, L, S).
    """
    B, L, H, E = queries.shape
    _, S, _, D = values.shape
    scale = scale if scale is not None else 1.0 / math.sqrt(E)

    out_dtype = queries.dtype            # A stored in input dtype (bf16 halves writeback)
    itemsize = jnp.dtype(out_dtype).itemsize

    vmem_cap = _tpu_vmem_capacity_bytes()
    budget = int(0.30 * vmem_cap)        # ~19 MiB on v7x (64 MiB), ~38 MiB on v5e/v6e (128 MiB)
    hg, tl, step_bytes = _pick_tiles(B, L, S, H, E, D, itemsize, budget)
    n_hg = H // hg
    n_l = pl.cdiv(L, tl)

    # bf16 exp only when inputs are already bf16 (A is stored bf16 anyway) and the
    # chip has a bf16 EUP (v6e / v7x, not v5e).
    exp_dtype = (jnp.bfloat16
                 if (jnp.dtype(out_dtype) == jnp.dtype(jnp.bfloat16) and _has_bf16_eup())
                 else jnp.float32)
    # Optional accuracy/throughput trade-off for f32 inputs: run the MXU in bf16.
    mxu_dtype = (jnp.bfloat16
                 if (use_bf16_matmul and jnp.dtype(out_dtype) == jnp.dtype(jnp.float32))
                 else None)

    # Head-major inputs (one fused XLA copy per operand). A comes out head-major
    # directly; V comes out lane-dense so only a free reshape remains.
    q_bh = jnp.transpose(queries, (0, 2, 1, 3))  # (B, H, L, E)
    k_bh = jnp.transpose(keys,    (0, 2, 1, 3))  # (B, H, S, E)
    v_bh = jnp.transpose(values,  (0, 2, 1, 3))  # (B, H, S, D)

    cost = pl.CostEstimate(
        flops=2 * B * H * L * S * (E + D),
        transcendentals=B * H * L * S,
        bytes_accessed=itemsize * (B * H * (L * E + S * E + S * D)
                                   + B * L * H * D + B * H * L * S),
    )
    # Generous but bounded: always <= 75% of physical VMEM (real headroom on v7x).
    vmem_limit = int(max(32 * 1024 * 1024,
                         min(int(0.75 * vmem_cap), 2 * step_bytes)))

    kernel = partial(_res_attention_kernel, scale=scale, hg=hg, d=D,
                     exp_dtype=exp_dtype, mxu_dtype=mxu_dtype)

    v_slab, attn = pl.pallas_call(
        kernel,
        out_shape=(
            jax.ShapeDtypeStruct((B, L, H * D), out_dtype),   # V as lane-dense slab
            jax.ShapeDtypeStruct((B, H, L, S), out_dtype),    # A head-major
        ),
        grid_spec=pltpu.PrefetchScalarGridSpec(
            num_scalar_prefetch=0,
            grid=(B, n_hg, n_l),          # L innermost -> K/V blocks stay resident
            in_specs=[
                pl.BlockSpec((1, hg, tl, E), lambda b, g, l: (b, g, l, 0)),
                pl.BlockSpec((1, hg, S, E),  lambda b, g, l: (b, g, 0, 0)),
                pl.BlockSpec((1, hg, S, D),  lambda b, g, l: (b, g, 0, 0)),
            ],
            out_specs=[
                pl.BlockSpec((1, tl, hg * D), lambda b, g, l: (b, l, g)),
                pl.BlockSpec((1, hg, tl, S),  lambda b, g, l: (b, g, l, 0)),
            ],
        ),
        compiler_params=pltpu.CompilerParams(
            dimension_semantics=("parallel", "parallel", "parallel"),
            vmem_limit_bytes=vmem_limit,
        ),
        cost_estimate=cost,
    )(q_bh, k_bh, v_bh)

    V = v_slab.reshape(B, L, H, D)   # free view; no extra HBM transpose pass
    return V, attn


def _reference(queries, keys, values, scale=None):
    B, L, H, E = queries.shape
    scale = scale if scale is not None else 1.0 / math.sqrt(E)
    scores = jnp.einsum('blhe,bshe->bhls', queries, keys)
    attn = jax.nn.softmax(scale * scores, axis=-1)
    V = jnp.einsum('bhls,bshd->blhd', attn, values)
    return V, attn


if __name__ == "__main__":
    key = jax.random.PRNGKey(0)
    B, L, S, H, E, D = 2, 8, 8, 4, 32, 32
    kq, kk, kv = jax.random.split(key, 3)
    queries = jax.random.normal(kq, (B, L, H, E), dtype=jnp.float32)
    keys_ = jax.random.normal(kk, (B, S, H, E), dtype=jnp.float32)
    values = jax.random.normal(kv, (B, S, H, D), dtype=jnp.float32)

    V, A = res_attention(queries, keys_, values)
    jax.block_until_ready((V, A))

    V_ref, A_ref = _reference(queries, keys_, values)
    assert V.shape == (B, L, H, D) and A.shape == (B, H, L, S)
    # approx=True reciprocal (EUP) is slightly lower precision than an exact divide.
    assert jnp.allclose(V, V_ref, atol=5e-3, rtol=5e-3)
    assert jnp.allclose(A, A_ref, atol=5e-3, rtol=5e-3)

    print("KERNEL_OK")
</pallas_src>

<mosaic_0001>
module attributes {stable_mosaic.version = 11 : i64} {
  func.func @_res_attention_kernel(%arg0: i32, %arg1: i32, %arg2: i32, %arg3: memref<1x4x8x32xf32, #tpu.memory_space<vmem>>, %arg4: memref<1x4x8x32xf32, #tpu.memory_space<vmem>>, %arg5: memref<1x4x8x32xf32, #tpu.memory_space<vmem>>, %arg6: memref<1x8x128xf32, #tpu.memory_space<vmem>>, %arg7: memref<1x4x8x8xf32, #tpu.memory_space<vmem>>) attributes {dimension_semantics = [#tpu.dimension_semantics<parallel>, #tpu.dimension_semantics<parallel>, #tpu.dimension_semantics<parallel>], iteration_bounds = array<i64: 2, 1, 1>, scalar_prefetch = 0 : i64, scratch_operands = 0 : i64, tpu.core_type = #tpu.core_type<tc>, window_params = [{transform_indices = @transform_0, window_bounds = array<i64: 1, 4, 8, 32>}, {transform_indices = @transform_1, window_bounds = array<i64: 1, 4, 8, 32>}, {transform_indices = @transform_2, window_bounds = array<i64: 1, 4, 8, 32>}, {transform_indices = @transform_3, window_bounds = array<i64: 1, 8, 128>}, {transform_indices = @transform_4, window_bounds = array<i64: 1, 4, 8, 8>}]} {
    %c0 = arith.constant 0 : index
    %c0_0 = arith.constant 0 : index
    %c0_1 = arith.constant 0 : index
    %c0_2 = arith.constant 0 : index
    %0 = vector.load %arg3[%c0, %c0_0, %c0_1, %c0_2] : memref<1x4x8x32xf32, #tpu.memory_space<vmem>>, vector<1x1x8x32xf32>
    %1 = vector.shape_cast %0 : vector<1x1x8x32xf32> to vector<8x32xf32>
    %c0_3 = arith.constant 0 : index
    %c0_4 = arith.constant 0 : index
    %c0_5 = arith.constant 0 : index
    %c0_6 = arith.constant 0 : index
    %2 = vector.load %arg4[%c0_3, %c0_4, %c0_5, %c0_6] : memref<1x4x8x32xf32, #tpu.memory_space<vmem>>, vector<1x1x8x32xf32>
    %3 = vector.shape_cast %2 : vector<1x1x8x32xf32> to vector<8x32xf32>
    %c0_7 = arith.constant 0 : index
    %c0_8 = arith.constant 0 : index
    %c0_9 = arith.constant 0 : index
    %c0_10 = arith.constant 0 : index
    %4 = vector.load %arg5[%c0_7, %c0_8, %c0_9, %c0_10] : memref<1x4x8x32xf32, #tpu.memory_space<vmem>>, vector<1x1x8x32xf32>
    %5 = vector.shape_cast %4 : vector<1x1x8x32xf32> to vector<8x32xf32>
    %cst = arith.constant 0.176776692 : f32
    %6 = vector.broadcast %cst : f32 to vector<8x32xf32>
    %7 = arith.mulf %1, %6 : vector<8x32xf32>
    %cst_11 = arith.constant dense<0.000000e+00> : vector<8x8xf32>
    %8 = tpu.matmul %7, %3, %cst_11 {dimension_numbers = #tpu.dot_dimension_numbers<[1], [1], [0], [0], [0, 0, 1, 0], [], []>} : vector<8x32xf32>, vector<8x32xf32>, vector<8x8xf32> -> vector<8x8xf32>
    %cst_12 = arith.constant dense<0xFF800000> : vector<8xf32>
    %9 = vector.multi_reduction <maximumf>, %8, %cst_12 [1] : vector<8x8xf32> to vector<8xf32>
    %10 = vector.shape_cast %9 : vector<8xf32> to vector<8x1xf32>
    %11 = vector.broadcast %10 : vector<8x1xf32> to vector<8x8xf32>
    %12 = arith.subf %8, %11 : vector<8x8xf32>
    %13 = math.exp %12 : vector<8x8xf32>
    %cst_13 = arith.constant dense<0.000000e+00> : vector<8xf32>
    %14 = vector.multi_reduction <add>, %13, %cst_13 [1] : vector<8x8xf32> to vector<8xf32>
    %15 = vector.shape_cast %14 : vector<8xf32> to vector<8x1xf32>
    %16 = tpu.reciprocal %15 {approx = true} : vector<8x1xf32> -> vector<8x1xf32>
    %17 = vector.broadcast %16 : vector<8x1xf32> to vector<8x8xf32>
    %18 = arith.mulf %13, %17 : vector<8x8xf32>
    %c0_14 = arith.constant 0 : index
    %c0_15 = arith.constant 0 : index
    %c0_16 = arith.constant 0 : index
    %c0_17 = arith.constant 0 : index
    %19 = vector.load %arg7[%c0_14, %c0_15, %c0_16, %c0_17] : memref<1x4x8x8xf32, #tpu.memory_space<vmem>>, vector<1x1x8x8xf32>
    %20 = vector.shape_cast %19 : vector<1x1x8x8xf32> to vector<8x8xf32>
    %21 = vector.shape_cast %18 : vector<8x8xf32> to vector<1x1x8x8xf32>
    tpu.vector_store %arg7[%c0_14, %c0_15, %c0_16, %c0_17], %21 {strides = array<i32>} : memref<1x4x8x8xf32, #tpu.memory_space<vmem>>, vector<1x1x8x8xf32>,
    %cst_18 = arith.constant dense<0.000000e+00> : vector<8x32xf32>
    %22 = tpu.matmul %18, %5, %cst_18 {dimension_numbers = #tpu.dot_dimension_numbers<[1], [0], [0], [1], [0, 0, 1, 1], [], []>} : vector<8x8xf32>, vector<8x32xf32>, vector<8x32xf32> -> vector<8x32xf32>
    %c0_19 = arith.constant 0 : index
    %c1 = arith.constant 1 : index
    %c0_20 = arith.constant 0 : index
    %c0_21 = arith.constant 0 : index
    %23 = vector.load %arg3[%c0_19, %c1, %c0_20, %c0_21] : memref<1x4x8x32xf32, #tpu.memory_space<vmem>>, vector<1x1x8x32xf32>
    %24 = vector.shape_cast %23 : vector<1x1x8x32xf32> to vector<8x32xf32>
    %c0_22 = arith.constant 0 : index
    %c1_23 = arith.constant 1 : index
    %c0_24 = arith.constant 0 : index
    %c0_25 = arith.constant 0 : index
    %25 = vector.load %arg4[%c0_22, %c1_23, %c0_24, %c0_25] : memref<1x4x8x32xf32, #tpu.memory_space<vmem>>, vector<1x1x8x32xf32>
    %26 = vector.shape_cast %25 : vector<1x1x8x32xf32> to vector<8x32xf32>
    %c0_26 = arith.constant 0 : index
    %c1_27 = arith.constant 1 : index
    %c0_28 = arith.constant 0 : index
    %c0_29 = arith.constant 0 : index
    %27 = vector.load %arg5[%c0_26, %c1_27, %c0_28, %c0_29] : memref<1x4x8x32xf32, #tpu.memory_space<vmem>>, vector<1x1x8x32xf32>
    %28 = vector.shape_cast %27 : vector<1x1x8x32xf32> to vector<8x32xf32>
    %cst_30 = arith.constant 0.176776692 : f32
    %29 = vector.broadcast %cst_30 : f32 to vector<8x32xf32>
    %30 = arith.mulf %24, %29 : vector<8x32xf32>
    %cst_31 = arith.constant dense<0.000000e+00> : vector<8x8xf32>
    %31 = tpu.matmul %30, %26, %cst_31 {dimension_numbers = #tpu.dot_dimension_numbers<[1], [1], [0], [0], [0, 0, 1, 0], [], []>} : vector<8x32xf32>, vector<8x32xf32>, vector<8x8xf32> -> vector<8x8xf32>
    %cst_32 = arith.constant dense<0xFF800000> : vector<8xf32>
    %32 = vector.multi_reduction <maximumf>, %31, %cst_32 [1] : vector<8x8xf32> to vector<8xf32>
    %33 = vector.shape_cast %32 : vector<8xf32> to vector<8x1xf32>
    %34 = vector.broadcast %33 : vector<8x1xf32> to vector<8x8xf32>
    %35 = arith.subf %31, %34 : vector<8x8xf32>
    %36 = math.exp %35 : vector<8x8xf32>
    %cst_33 = arith.constant dense<0.000000e+00> : vector<8xf32>
    %37 = vector.multi_reduction <add>, %36, %cst_33 [1] : vector<8x8xf32> to vector<8xf32>
    %38 = vector.shape_cast %37 : vector<8xf32> to vector<8x1xf32>
    %39 = tpu.reciprocal %38 {approx = true} : vector<8x1xf32> -> vector<8x1xf32>
    %40 = vector.broadcast %39 : vector<8x1xf32> to vector<8x8xf32>
    %41 = arith.mulf %36, %40 : vector<8x8xf32>
    %c0_34 = arith.constant 0 : index
    %c1_35 = arith.constant 1 : index
    %c0_36 = arith.constant 0 : index
    %c0_37 = arith.constant 0 : index
    %42 = vector.load %arg7[%c0_34, %c1_35, %c0_36, %c0_37] : memref<1x4x8x8xf32, #tpu.memory_space<vmem>>, vector<1x1x8x8xf32>
    %43 = vector.shape_cast %42 : vector<1x1x8x8xf32> to vector<8x8xf32>
    %44 = vector.shape_cast %41 : vector<8x8xf32> to vector<1x1x8x8xf32>
    tpu.vector_store %arg7[%c0_34, %c1_35, %c0_36, %c0_37], %44 {strides = array<i32>} : memref<1x4x8x8xf32, #tpu.memory_space<vmem>>, vector<1x1x8x8xf32>,
    %cst_38 = arith.constant dense<0.000000e+00> : vector<8x32xf32>
    %45 = tpu.matmul %41, %28, %cst_38 {dimension_numbers = #tpu.dot_dimension_numbers<[1], [0], [0], [1], [0, 0, 1, 1], [], []>} : vector<8x8xf32>, vector<8x32xf32>, vector<8x32xf32> -> vector<8x32xf32>
    %c0_39 = arith.constant 0 : index
    %c2 = arith.constant 2 : index
    %c0_40 = arith.constant 0 : index
    %c0_41 = arith.constant 0 : index
    %46 = vector.load %arg3[%c0_39, %c2, %c0_40, %c0_41] : memref<1x4x8x32xf32, #tpu.memory_space<vmem>>, vector<1x1x8x32xf32>
    %47 = vector.shape_cast %46 : vector<1x1x8x32xf32> to vector<8x32xf32>
    %c0_42 = arith.constant 0 : index
    %c2_43 = arith.constant 2 : index
    %c0_44 = arith.constant 0 : index
    %c0_45 = arith.constant 0 : index
    %48 = vector.load %arg4[%c0_42, %c2_43, %c0_44, %c0_45] : memref<1x4x8x32xf32, #tpu.memory_space<vmem>>, vector<1x1x8x32xf32>
    %49 = vector.shape_cast %48 : vector<1x1x8x32xf32> to vector<8x32xf32>
    %c0_46 = arith.constant 0 : index
    %c2_47 = arith.constant 2 : index
    %c0_48 = arith.constant 0 : index
    %c0_49 = arith.constant 0 : index
    %50 = vector.load %arg5[%c0_46, %c2_47, %c0_48, %c0_49] : memref<1x4x8x32xf32, #tpu.memory_space<vmem>>, vector<1x1x8x32xf32>
    %51 = vector.shape_cast %50 : vector<1x1x8x32xf32> to vector<8x32xf32>
    %cst_50 = arith.constant 0.176776692 : f32
    %52 = vector.broadcast %cst_50 : f32 to vector<8x32xf32>
    %53 = arith.mulf %47, %52 : vector<8x32xf32>
    %cst_51 = arith.constant dense<0.000000e+00> : vector<8x8xf32>
    %54 = tpu.matmul %53, %49, %cst_51 {dimension_numbers = #tpu.dot_dimension_numbers<[1], [1], [0], [0], [0, 0, 1, 0], [], []>} : vector<8x32xf32>, vector<8x32xf32>, vector<8x8xf32> -> vector<8x8xf32>
    %cst_52 = arith.constant dense<0xFF800000> : vector<8xf32>
    %55 = vector.multi_reduction <maximumf>, %54, %cst_52 [1] : vector<8x8xf32> to vector<8xf32>
    %56 = vector.shape_cast %55 : vector<8xf32> to vector<8x1xf32>
    %57 = vector.broadcast %56 : vector<8x1xf32> to vector<8x8xf32>
    %58 = arith.subf %54, %57 : vector<8x8xf32>
    %59 = math.exp %58 : vector<8x8xf32>
    %cst_53 = arith.constant dense<0.000000e+00> : vector<8xf32>
    %60 = vector.multi_reduction <add>, %59, %cst_53 [1] : vector<8x8xf32> to vector<8xf32>
    %61 = vector.shape_cast %60 : vector<8xf32> to vector<8x1xf32>
    %62 = tpu.reciprocal %61 {approx = true} : vector<8x1xf32> -> vector<8x1xf32>
    %63 = vector.broadcast %62 : vector<8x1xf32> to vector<8x8xf32>
    %64 = arith.mulf %59, %63 : vector<8x8xf32>
    %c0_54 = arith.constant 0 : index
    %c2_55 = arith.constant 2 : index
    %c0_56 = arith.constant 0 : index
    %c0_57 = arith.constant 0 : index
    %65 = vector.load %arg7[%c0_54, %c2_55, %c0_56, %c0_57] : memref<1x4x8x8xf32, #tpu.memory_space<vmem>>, vector<1x1x8x8xf32>
    %66 = vector.shape_cast %65 : vector<1x1x8x8xf32> to vector<8x8xf32>
    %67 = vector.shape_cast %64 : vector<8x8xf32> to vector<1x1x8x8xf32>
    tpu.vector_store %arg7[%c0_54, %c2_55, %c0_56, %c0_57], %67 {strides = array<i32>} : memref<1x4x8x8xf32, #tpu.memory_space<vmem>>, vector<1x1x8x8xf32>,
    %cst_58 = arith.constant dense<0.000000e+00> : vector<8x32xf32>
    %68 = tpu.matmul %64, %51, %cst_58 {dimension_numbers = #tpu.dot_dimension_numbers<[1], [0], [0], [1], [0, 0, 1, 1], [], []>} : vector<8x8xf32>, vector<8x32xf32>, vector<8x32xf32> -> vector<8x32xf32>
    %c0_59 = arith.constant 0 : index
    %c3 = arith.constant 3 : index
    %c0_60 = arith.constant 0 : index
    %c0_61 = arith.constant 0 : index
    %69 = vector.load %arg3[%c0_59, %c3, %c0_60, %c0_61] : memref<1x4x8x32xf32, #tpu.memory_space<vmem>>, vector<1x1x8x32xf32>
    %70 = vector.shape_cast %69 : vector<1x1x8x32xf32> to vector<8x32xf32>
    %c0_62 = arith.constant 0 : index
    %c3_63 = arith.constant 3 : index
    %c0_64 = arith.constant 0 : index
    %c0_65 = arith.constant 0 : index
    %71 = vector.load %arg4[%c0_62, %c3_63, %c0_64, %c0_65] : memref<1x4x8x32xf32, #tpu.memory_space<vmem>>, vector<1x1x8x32xf32>
    %72 = vector.shape_cast %71 : vector<1x1x8x32xf32> to vector<8x32xf32>
    %c0_66 = arith.constant 0 : index
    %c3_67 = arith.constant 3 : index
    %c0_68 = arith.constant 0 : index
    %c0_69 = arith.constant 0 : index
    %73 = vector.load %arg5[%c0_66, %c3_67, %c0_68, %c0_69] : memref<1x4x8x32xf32, #tpu.memory_space<vmem>>, vector<1x1x8x32xf32>
    %74 = vector.shape_cast %73 : vector<1x1x8x32xf32> to vector<8x32xf32>
    %cst_70 = arith.constant 0.176776692 : f32
    %75 = vector.broadcast %cst_70 : f32 to vector<8x32xf32>
    %76 = arith.mulf %70, %75 : vector<8x32xf32>
    %cst_71 = arith.constant dense<0.000000e+00> : vector<8x8xf32>
    %77 = tpu.matmul %76, %72, %cst_71 {dimension_numbers = #tpu.dot_dimension_numbers<[1], [1], [0], [0], [0, 0, 1, 0], [], []>} : vector<8x32xf32>, vector<8x32xf32>, vector<8x8xf32> -> vector<8x8xf32>
    %cst_72 = arith.constant dense<0xFF800000> : vector<8xf32>
    %78 = vector.multi_reduction <maximumf>, %77, %cst_72 [1] : vector<8x8xf32> to vector<8xf32>
    %79 = vector.shape_cast %78 : vector<8xf32> to vector<8x1xf32>
    %80 = vector.broadcast %79 : vector<8x1xf32> to vector<8x8xf32>
    %81 = arith.subf %77, %80 : vector<8x8xf32>
    %82 = math.exp %81 : vector<8x8xf32>
    %cst_73 = arith.constant dense<0.000000e+00> : vector<8xf32>
    %83 = vector.multi_reduction <add>, %82, %cst_73 [1] : vector<8x8xf32> to vector<8xf32>
    %84 = vector.shape_cast %83 : vector<8xf32> to vector<8x1xf32>
    %85 = tpu.reciprocal %84 {approx = true} : vector<8x1xf32> -> vector<8x1xf32>
    %86 = vector.broadcast %85 : vector<8x1xf32> to vector<8x8xf32>
    %87 = arith.mulf %82, %86 : vector<8x8xf32>
    %c0_74 = arith.constant 0 : index
    %c3_75 = arith.constant 3 : index
    %c0_76 = arith.constant 0 : index
    %c0_77 = arith.constant 0 : index
    %88 = vector.load %arg7[%c0_74, %c3_75, %c0_76, %c0_77] : memref<1x4x8x8xf32, #tpu.memory_space<vmem>>, vector<1x1x8x8xf32>
    %89 = vector.shape_cast %88 : vector<1x1x8x8xf32> to vector<8x8xf32>
    %90 = vector.shape_cast %87 : vector<8x8xf32> to vector<1x1x8x8xf32>
    tpu.vector_store %arg7[%c0_74, %c3_75, %c0_76, %c0_77], %90 {strides = array<i32>} : memref<1x4x8x8xf32, #tpu.memory_space<vmem>>, vector<1x1x8x8xf32>,
    %cst_78 = arith.constant dense<0.000000e+00> : vector<8x32xf32>
    %91 = tpu.matmul %87, %74, %cst_78 {dimension_numbers = #tpu.dot_dimension_numbers<[1], [0], [0], [1], [0, 0, 1, 1], [], []>} : vector<8x8xf32>, vector<8x32xf32>, vector<8x32xf32> -> vector<8x32xf32>
    %92 = tpu.concatenate %22, %45, %68, %91 in 1 : vector<8x32xf32>, vector<8x32xf32>, vector<8x32xf32>, vector<8x32xf32> -> vector<8x128xf32>
    %c0_79 = arith.constant 0 : index
    %c0_80 = arith.constant 0 : index
    %c0_81 = arith.constant 0 : index
    %93 = vector.load %arg6[%c0_79, %c0_80, %c0_81] : memref<1x8x128xf32, #tpu.memory_space<vmem>>, vector<1x8x128xf32>
    %94 = vector.shape_cast %93 : vector<1x8x128xf32> to vector<8x128xf32>
    %95 = vector.shape_cast %92 : vector<8x128xf32> to vector<1x8x128xf32>
    tpu.vector_store %arg6[%c0_79, %c0_80, %c0_81], %95 {strides = array<i32>} : memref<1x8x128xf32, #tpu.memory_space<vmem>>, vector<1x8x128xf32>,
    return
  }
  func.func @transform_0(%arg0: i32, %arg1: i32, %arg2: i32) -> (i32, i32, i32, i32) {
    %c0_i32 = arith.constant 0 : i32
    %c0_i32_0 = arith.constant 0 : i32
    return %arg0, %arg1, %arg2, %c0_i32 : i32, i32, i32, i32
  }
  func.func @transform_1(%arg0: i32, %arg1: i32, %arg2: i32) -> (i32, i32, i32, i32) {
    %c0_i32 = arith.constant 0 : i32
    %c0_i32_0 = arith.constant 0 : i32
    %c0_i32_1 = arith.constant 0 : i32
    return %arg0, %arg1, %c0_i32, %c0_i32_0 : i32, i32, i32, i32
  }
  func.func @transform_2(%arg0: i32, %arg1: i32, %arg2: i32) -> (i32, i32, i32, i32) {
    %c0_i32 = arith.constant 0 : i32
    %c0_i32_0 = arith.constant 0 : i32
    %c0_i32_1 = arith.constant 0 : i32
    return %arg0, %arg1, %c0_i32, %c0_i32_0 : i32, i32, i32, i32
  }
  func.func @transform_3(%arg0: i32, %arg1: i32, %arg2: i32) -> (i32, i32, i32) {
    %c0_i32 = arith.constant 0 : i32
    return %arg0, %arg2, %arg1 : i32, i32, i32
  }
  func.func @transform_4(%arg0: i32, %arg1: i32, %arg2: i32) -> (i32, i32, i32, i32) {
    %c0_i32 = arith.constant 0 : i32
    %c0_i32_0 = arith.constant 0 : i32
    return %arg0, %arg1, %arg2, %c0_i32 : i32, i32, i32, i32
  }
}

</mosaic_0001>

<bundles_post_ra>
// kernel: res_attention.1
= control target key start
LH: loop header
LB: loop body
LE: loop exit
PB: predicated region body
PF: predicated region fallthrough
CT: control target
= control target key end

     0   :  { %10 = vsyncpa [#allocation3], 0  ;;  %s1234_s0 = inlined_call_operand.vmem [shape: f32[2,4,8,32], index: 0, kind: input, shape index: {}]   ;;  %s1235_s1 = inlined_call_operand.vmem [shape: f32[2,4,8,32], index: 1, kind: input, shape index: {}]   ;;  %s1236_s2 = inlined_call_operand.vmem [shape: f32[2,4,8,32], index: 2, kind: input, shape index: {}]   ;;  %s1237_s3 = inlined_call_operand.vmem [shape: f32[2,8,128], index: 3, kind: output, shape index: {0}]   ;;  %s1238_s4 = inlined_call_operand.hbm [shape: f32[2,4,8,8], index: 4, kind: output, shape index: {1}]  }
   0x1   :  { %12 = vsyncpa [#allocation3 + $0x1], 0  ;;  %s1062_s15 = smov 0   ;;  %s1064_s16 = smov 0  }
   0x2   :  { %s1066_s17 = smov 0   ;;  %s1068_s18 = smov 0  }
   0x3   :  { %s1070_s19 = smov 0   ;;  %s1072_s20 = smov 0  }
   0x4 LB: > { %s830_s21 = sadd.s32 4294967295, %s1030_s20   ;;  %s831_s22 = sadd.s32 4294967294, %s1030_s20   ;;  %s1030_s20 = sphi %s1072_s20, %s18_s20   ;;  %s1026_s19 = sphi %s1070_s19, %s1245_s19   ;;  %s1022_s18 = sphi %s1068_s18, %s1244_s18   ;;  %s1018_s17 = sphi %s1066_s17, %s1243_s17   ;;  %s1014_s16 = sphi %s1064_s16, %s1242_s16   ;;  %s1010_s15 = sphi %s1062_s15, %s1241_s15  }
   0x5   : > { %s37_s23 = sadd.s32 1, %s1026_s19  ;;  %s164_s24 = sadd.s32 1, %s1018_s17 }
   0x6   : > { %p39_p0 = scmp.ge.s32.totalorder %s37_s23, 2  ;;  %p174_p1 = scmp.ne.s32.totalorder %s1018_s17, %s1014_s16 }
   0x7   : > { %p175_p2 = scmp.eq.s32.totalorder %s830_s21, 1  ;;  %p180_p3 = scmp.ne.s32.totalorder %s1014_s16, %s1010_s15 }
   0x8   : > { %s1247_s23 = smov (%p39_p0, %s37_s23), 0  ;;  %p181_p5 = scmp.eq.s32.totalorder %s831_s22, 1 }
   0x9   : > { %p1102_p4 = por %p175_p2, %p174_p1  ;;  %s157_s26 = ssub.s32 %s1026_s19, %s1247_s23 }
   0xa   : > { %p834_p6 = scmp.ge.s32.totalorder %s1030_s20, 1  ;;  %p162_p7 = scmp.eq.s32.totalorder %s157_s26, 0 }
   0xb   : > { %p1109_p8 = por %p181_p5, %p180_p3  ;;  %p241_p9 = scmp.lt.s32.totalorder %s1030_s20, 3 }
   0xc   : > { %s1115_s28 = scalar_select %p162_p7, %s1018_s17, %s164_s24  }
   0xd   : > { %p242_p10 = pnand %p834_p6, %p241_p9 }
   0xe   : > { %p303_p11 = scmp.lt.s32.totalorder (!%p242_p10), %s1022_s18, 1  ;;  %s299_s14 = sand.u32 (!%p242_p10), 1, %s1014_s16  }
   0xf   : > { %245 = sbr.rel (%p242_p10) target bundleno = 1046 (0x416), region = 32  ;;  %s835_s21 = sshll.u32 (!%p242_p10), %s299_s14, 5 }
  0x10   : > { %s1166_s22 = scalar_lea.vmem (!%p242_p10), [#allocation2], %s835_s21  ;;  %s1032_s24 = smov (!%p242_p10), 32  }
  0x11   : > { %s1033_s26 = smov (!%p242_p10), 96   ;;  %s667_s8 = sshll.u32 (!%p242_p10), %s1166_s22, 4  ;;  %s668_s8 = int_to_ptr.vmem [resolvable:$true] %s667_s8 }
  0x14   : > { %s1119_s29 = scalar_select %p303_p11, %s1022_s18, 1  ;;  %vm350_vm0 = vcmask 261120   ;;  %vm377_vm1 = vcmask 64512  }
  0x16   : > { %s1122_s30 = sshll.u32 %s1119_s29, 5 }
  0x17   : > { %s1128_s7 = scalar_lea.vmem %s1235_s1, %s1122_s30  ;;  %s1134_s10 = scalar_lea.vmem %s1234_s0, %s1122_s30 }
  0x18   : > { %v347_v0 = vld [vmem:[%s1128_s7] sm:$0xff]  ;;  %v847_v1 = vld [vmem:[%s1128_s7 + $0x8] sm:$0xff]  ;;  %v861_v5 = vld [vmem:[%s1128_s7 + $0x18] sm:$0xff]  ;;  %s1157_s13 = scalar_lea.vmem %s1236_s2, %s1122_s30  ;;  %s875_s30 = sshll.u32 %s1022_s18, 5 }
  0x19   : > { %v346_v2 = vld [vmem:[%s1134_s10] sm:$0xff]  ;;  %843 = vmatpush.xpose.msk.msra.mxu0 %vm350_vm0, %v347_v0  ;;  %849 = vmatpush.xpose.msk.msra.mxu2 %vm350_vm0, %v847_v1  ;;  %v846_v4 = vld [vmem:[%s1134_s10 + $0x8] sm:$0xff]  ;;  %v860_v7 = vld [vmem:[%s1134_s10 + $0x18] sm:$0xff]  ;;  %s972_s18 = scalar_lea.hbm %s1238_s4, 64 }
  0x1a   : > { %v349_v3 = vmul.f32 0.17677669, %v346_v2  ;;  %v419_v6 = vmul.f32 0.17677669, %v846_v4  ;;  %v557_v8 = vmul.f32 0.17677669, %v860_v7 }
  0x1b   : > { %v348_v25 = vld [vmem:[%s1157_s13] sm:$0xff]  ;;  %v854_v26 = vld [vmem:[%s1128_s7 + $0x10] sm:$0xff]  ;;  %v848_v27 = vld [vmem:[%s1157_s13 + $0x8] sm:$0xff]  ;;  %s666_s7 = scalar_lea.hbm %s1238_s4, %s875_s30 }
  0x1c   : > { %844 = vmatmul.msk.f32.vlgmr.msra.gmra.mxu0 %vm350_vm0, %v349_v3  ;;  %850 = vmatmul.msk.f32.vlgmr.msra.gmra.mxu2 %vm350_vm0, %v419_v6  ;;  %v853_v33 = vld [vmem:[%s1134_s10 + $0x10] sm:$0xff]  ;;  %v862_v45 = vld [vmem:[%s1157_s13 + $0x18] sm:$0xff]  ;;  %s669_s9 = sshll.u32 %s666_s7, 4  ;;  %s649_s10 = scalar_lea.sflag [#allocation3], %s299_s14  ;;  %s670_s9 = int_to_ptr.hbm [resolvable:$true] %s669_s9 }
  0x1d   : > { %863 = vmatpush.xpose.msk.msrb.mxu0 %vm350_vm0, %v861_v5  ;;  %408 = vmatpush.msra.mxu1 %v348_v25  ;;  %v488_v36 = vmul.f32 0.17677669, %v853_v33  ;;  %v855_v54 = vld [vmem:[%s1157_s13 + $0x10] sm:$0xff]  ;;  %s966_s11 = sshra.s32 %s670_s9, 4  ;;  %s967_s11 = int_to_ptr.hbm [resolvable:$true] %s966_s11 }
  0x1e   : > { %477 = vmatpush.msra.mxu3 %v848_v27  ;;  %615 = vmatpush.msrb.mxu2 %v862_v45  ;;  %s968_s12 = scalar_lea.hbm %s967_s11, 32  ;;  %p973_p1 = scmp.lt.s32.totalorder %s967_s11, %s1238_s4 }
  0x1f   : > { %856 = vmatpush.xpose.msk.msrb.mxu1 %vm350_vm0, %v854_v26  ;;  %p969_p12 = scmp.ne.s32.totalorder %s967_s11, %s968_s12  ;;  %p974_p2 = scmp.lt.s32.totalorder %s972_s18, %s968_s12 }
  0x20   : > { %546 = vmatpush.msrb.mxu3 %v855_v54 }
  0x21   : > { %p970_p13 = pnand %p969_p12, %p1102_p4  ;;  %p975_p3 = por %p974_p2, %p973_p1 }
  0x23   : > { %p971_p0 = pneg %p970_p13 }
  0x24   : > { %864 = vmatmul.msk.f32.vlgmr.msrb.gmra.mxu0 %vm350_vm0, %v557_v8 }
  0x25   : > { %p976_p5 = pnand %p975_p3, %p971_p0 }
  0x99   : > { %v374_v9 = vpop.f32.mrf.mxu0 }
  0x9a   : > { %v378_v10 = vsel %vm377_vm1, %v374_v9, -inf }
  0x9b   : > { %379 = vmax.xlane.f32.xlu0 %v378_v10 }
  0x9f   : > { %v443_v11 = vpop.f32.mrf.mxu2 }
  0xa0   : > { %v446_v12 = vsel %vm377_vm1, %v443_v11, -inf }
  0xa1   : > { %447 = vmax.xlane.f32.xlu1 %v446_v12  ;;  %v581_v13 = vpop.f32.mrf.mxu0 }
  0xa2   : > { %v584_v14 = vsel %vm377_vm1, %v581_v13, -inf }
  0xa3   : > { %585 = vmax.xlane.f32.xlu2 %v584_v14 }
 0x10e   : > { %v380_v15 = vpop.xlane.xlu0 %379 }
 0x10f   : > { %v381_v16 = vsub.f32 %v374_v9, %v380_v15 }
 0x111   : > { %v382_v17 = vmul.f32 1.442695, %v381_v16 }
 0x113   : > { %936 = vpow2.f32 %v382_v17 }
 0x114   : > { %v448_v18 = vpop.xlane.xlu1 %447 }
 0x115   : > { %v449_v19 = vsub.f32 %v443_v11, %v448_v18 }
 0x116   : > { %v586_v28 = vpop.xlane.xlu2 %585 }
 0x117   : > { %v450_v20 = vmul.f32 1.442695, %v449_v19  ;;  %v587_v37 = vsub.f32 %v581_v13, %v586_v28 }
 0x119   : > { %v937_v21 = vpop.eup %936  ;;  %938 = vpow2.f32 %v450_v20  ;;  %v588_v39 = vmul.f32 1.442695, %v587_v37 }
 0x11a   : > { %v384_v22 = vsel %vm377_vm1, %v937_v21, 0.0 }
 0x11b   : > { %385 = vadd.xlane.f32.xlu0 %v384_v22 }
 0x11f   : > { %v939_v23 = vpop.eup %938 }
 0x120   : > { %v452_v24 = vsel %vm377_vm1, %v939_v23, 0.0 }
 0x121   : > { %453 = vadd.xlane.f32.xlu2 %v452_v24 }
 0x18e   : > { %v386_v29 = vpop.xlane.xlu0 %385 }
 0x18f   : > { %940 = vrcp.f32 %v386_v29 }
 0x194   : > { %v454_v30 = vpop.xlane.xlu2 %453 }
 0x195   : > { %v941_v31 = vpop.eup %940  ;;  %942 = vrcp.f32 %v454_v30 }
 0x196   : > { %v388_v32 = vmul.f32 %v941_v31, %v937_v21  ;;  %944 = vpow2.f32 %v588_v39 }
 0x198   : > { %389 = vst.msk [vmem:[%s1166_s22] sm:$0xff] %vm377_vm1, %v388_v32  ;;  %845 = vmatmul.msk.f32.vlgmr.msra.gmra.mxu1 %vm377_vm1, %v388_v32 }
 0x19b   : > { %v943_v34 = vpop.eup %942 }
 0x19c   : > { %v456_v35 = vmul.f32 %v943_v34, %v939_v23  ;;  %v945_v42 = vpop.eup %944 }
 0x19d   : > { %v590_v44 = vsel %vm377_vm1, %v945_v42, 0.0 }
 0x19e   : > { %851 = vst.msk [vmem:[%s1166_s22 + $0x8] sm:$0xff] %vm377_vm1, %v456_v35  ;;  %852 = vmatmul.msk.f32.vlgmr.msra.gmra.mxu3 %vm377_vm1, %v456_v35 }
 0x1a0   : > { %857 = vmatmul.msk.f32.vlgmr.msrb.gmra.mxu1 %vm350_vm0, %v488_v36 }
 0x215   : > { %v1176_v38 = vpop.f32.mrf.mxu1 }
 0x21d   : > { %v512_v40 = vpop.f32.mrf.mxu1 }
 0x21e   : > { %v515_v41 = vsel %vm377_vm1, %v512_v40, -inf }
 0x21f   : > { %516 = vmax.xlane.f32.xlu1 %v515_v41 }
 0x221   : > { %v479_v43 = vpop.f32.mrf.mxu3 }
 0x222   : > { %621 = vrot.lane.b32.xlu2 %v479_v43, %s1032_s24 }
 0x227   : > { %591 = vadd.xlane.f32.xlu1 %v590_v44 }
 0x292   : > { %v517_v46 = vpop.xlane.xlu1 %516 }
 0x293   : > { %v518_v47 = vsub.f32 %v512_v40, %v517_v46 }
 0x295   : > { %v519_v48 = vmul.f32 1.442695, %v518_v47 }
 0x297   : > { %946 = vpow2.f32 %v519_v48 }
 0x29a   : > { %v592_v49 = vpop.xlane.xlu1 %591 }
 0x29b   : > { %948 = vrcp.f32 %v592_v49 }
 0x29d   : > { %v947_v50 = vpop.eup %946 }
 0x29e   : > { %v521_v51 = vsel %vm377_vm1, %v947_v50, 0.0 }
 0x29f   : > { %522 = vadd.xlane.f32.xlu0 %v521_v51 }
 0x2a1   : > { %v949_v52 = vpop.eup %948 }
 0x2a2   : > { %v594_v53 = vmul.f32 %v949_v52, %v945_v42 }
 0x2a4   : > { %865 = vst.msk [vmem:[%s1166_s22 + $0x18] sm:$0xff] %vm377_vm1, %v594_v53  ;;  %866 = vmatmul.msk.f32.vlgmr.msrb.gmra.mxu2 %vm377_vm1, %v594_v53 }
 0x312   : > { %v523_v55 = vpop.xlane.xlu0 %522 }
 0x313   : > { %950 = vrcp.f32 %v523_v55 }
 0x319   : > { %v951_v56 = vpop.eup %950 }
 0x31a   : > { %v525_v57 = vmul.f32 %v951_v56, %v947_v50 }
 0x31c   : > { %858 = vst.msk [vmem:[%s1166_s22 + $0x10] sm:$0xff] %vm377_vm1, %v525_v57  ;;  %859 = vmatmul.msk.f32.vlgmr.msrb.gmra.mxu3 %vm377_vm1, %v525_v57 }
 0x327   : > { %v617_v58 = vpop.f32.mrf.mxu2 }
 0x328   : > { %629 = vrot.lane.b32.xlu1 %v617_v58, %s1033_s26 }
 0x329   : > { %979 = shalt.err (!%p976_p5)
}
 0x32a   : > { %s1034_s14 = smov 128   ;;  %s1035_s22 = smov 8   ;;  %v622_v60 = vpop.permute.xlu2 %621  ;;  %vm633_vm2 = vcmask 523264   ;;  %vm635_vm3 = vcmask 785408  }
 0x32b   : > { %876 = dma.vmem_to_hbm [thread:$0]  (%p1102_p4), %s668_s8, 512, %s670_s9, %s649_s10, %s1034_s14, %s1034_s14, %s1035_s22   ;;  %v632_v61 = vsel %vm350_vm0, %v1176_v38, %v622_v60 }
 0x32c   : > { %s1036_s30 = smov 64   ;;  %s842_s5 = sshll.u32 %s1119_s29, 3 }
 0x32d   : > { %s344_s11 = scalar_lea.vmem %s1237_s3, %s842_s5 }
 0x39a   : > { %v630_v63 = vpop.permute.xlu1 %629 }
 0x39f   : > { %v548_v59 = vpop.f32.mrf.mxu3 }
 0x3a0   : > { %625 = vrot.lane.b32.xlu0 %v548_v59, %s1036_s30 }
 0x412   : > { %v626_v62 = vpop.permute.xlu0 %625 }
 0x413   : > { %v634_v0 = vsel %vm633_vm2, %v632_v61, %v626_v62 }
 0x414   : > { %v636_v1 = vsel %vm635_vm3, %v634_v0, %v630_v63 }
 0x415   : > { %637 = vst [vmem:[%s344_s11] sm:$0xff] %v636_v1 }
 0x416 PF: > { %p882_p4 = scmp.ge.s32.totalorder %s1030_s20, 2  ;;  %s697_s25 = sand.u32 1, %s1010_s15  }
 0x417   : > { %s698_s29 = scalar_lea.sflag [#allocation3], %s697_s25 }
 0x418   : > { %p879_p6 = pnand %p882_p4, %p1109_p8 }
 0x41a   : > { %p880_p7 = pneg %p879_p6 }
 0x41c   : > { %1005 = dma.done.wait (%p880_p7), %s698_s29, 512  }
 0x41d   : > { %1007 = vsyncadd (%p880_p7), %s698_s29, 4294966784  ;;  %s18_s20 = sadd.s32 1, %s1030_s20   ;;  %s1241_s15 = smov %s1014_s16 }
 0x41e   : > { %p15_p9 = scmp.ge.s32.totalorder %s18_s20, 4   ;;  %s1242_s16 = smov %s1018_s17 }
 0x41f   : > { %s1243_s17 = smov %s1115_s28  ;;  %s1244_s18 = smov %s1026_s19 }
 0x420   : > { %s1245_s19 = smov %s1247_s23  ;;  %17 = sbr.rel (!%p15_p9) target bundleno = 4 (0x4), region = 97 }
 0x425   :  { %704 = vsyncpa [#allocation3], 1 }
 0x426   :  { %706 = vsyncpa [#allocation3 + $0x1], 1 }

</bundles_post_ra>
